<compile_context>
chip_gen: v7x
topology: tpu7x:2x2x1
jax: 0.10.0
libtpu: 0.0.40
codegen_flags: <defaults>
</compile_context>

<pallas_src>
import functools

import jax
import jax.numpy as jnp
from jax.experimental import pallas as pl
from jax.experimental.pallas import tpu as pltpu


def _reg_odefunc_kernel(x_ref, wx_ref, b1_ref, w2t_ref, b2_ref, c_ref,
                        dx_ref, dlogp_ref, parts_ref,
                        *, d, tile_b, true_b, inv_b, needs_mask):
    """One batch tile (batch on lanes): odefunc fwd + analytic trace + reg partials."""
    i = pl.program_id(0)

    xT = x_ref[...].astype(jnp.float32)            # (D, TB)   f32 compute
    wx = wx_ref[...]                               # (H, D)
    w2t = w2t_ref[...]                             # (H, D)  == W2^T

    # hidden pre-activation (H, TB): D unrolled VPU broadcast-FMAs (K=D is far
    # too small to load the MXU), then the t-term folded into the bias.
    pre = wx[:, 0:1] * xT[0:1, :]
    for dd in range(1, d):
        pre = pre + wx[:, dd:dd + 1] * xT[dd:dd + 1, :]
    pre = pre + b1_ref[...]                        # (H,1) lane-broadcast
    a = jnp.tanh(pre)                              # (H, TB)   EUP

    # dx^T (D, TB): one (H,TB) multiply + sublane reduce per output feature.
    rows = [jnp.sum(w2t[:, dd:dd + 1] * a, axis=0, keepdims=True)
            for dd in range(d)]
    dxT = jnp.concatenate(rows, axis=0) + b2_ref[...]     # (D, TB) f32

    # exact divergence: sum_h sech^2(pre_h) * c_h  -> lane-dense (1, TB)
    div = jnp.sum((1.0 - a * a) * c_ref[...], axis=0, keepdims=True)

    dx_ref[...] = dxT.astype(dx_ref.dtype)
    dlogp_ref[...] = -div

    # per-tile regularization partial sums (mask lane-padded columns)
    sq = dxT * dxT
    ab = jnp.abs(dxT)
    if needs_mask:
        ids = i * tile_b + jax.lax.broadcasted_iota(jnp.int32, (1, tile_b), 1)
        m = (ids < true_b).astype(jnp.float32)
        sq = sq * m
        ab = ab * m
    kin_p = 0.5 * inv_b * jnp.sum(sq)
    l1_p = inv_b * jnp.sum(ab)
    row = jax.lax.broadcasted_iota(jnp.int32, (1, 2, 128), 1)
    parts_ref[...] = jnp.where(row == 0, kin_p, l1_p)      # row0=kin, row1=l1


def prepare_params(params):
    """Pure-weight preprocessing. Hoist OUT of the per-ODE-step call path."""
    W1, b1, W2, b2 = params            # W1: (H, D+1), b1: (H,), W2: (D, H), b2: (D,)
    H, Dp1 = W1.shape
    D = Dp1 - 1
    wx = W1[:, :D]                                         # (H, D)
    wt = W1[:, D]                                          # (H,)   time column
    w2t = jnp.transpose(W2)                                # (H, D)
    c = jnp.sum(wx * w2t, axis=1).reshape(H, 1)            # (H, 1) trace weights
    return dict(wx=wx, wt=wt, b1=b1, w2t=w2t,
                b2=jnp.reshape(b2, (D, 1)), c=c, D=D, H=H)


def regularized_odefunc_forward(t, state, prepped, *, tile_b=2048,
                                stream_dtype=None):
    """Mirrors RegularizedODEfunc.forward(t, state).

    state = (x, logp) or (x, logp, *reg_states). Returns (dx, dlogp) or
    (dx, dlogp, reg_kin, reg_l1).
    """
    x, logp = state[0], state[1]
    B, D = x.shape
    assert D == prepped["D"]
    H = prepped["H"]

    # only t-dependent per-call weight work
    b1_eff = (prepped["b1"]
              + jnp.asarray(t, jnp.float32) * prepped["wt"]).reshape(H, 1)

    # tiling: batch on the lane axis; multi-tile lane width is a 128-multiple
    if B <= tile_b:
        tb, Bp = B, B
    else:
        tb = max(128, (tile_b // 128) * 128)
        Bp = -(-B // tb) * tb
    grid = Bp // tb
    needs_mask = Bp != B

    sdt = jnp.dtype(stream_dtype) if stream_dtype is not None else x.dtype
    xT = jnp.transpose(x).astype(sdt)                      # (D, B) lane-dense
    if needs_mask:
        xT = jnp.pad(xT, ((0, 0), (0, Bp - B)))

    kernel = functools.partial(
        _reg_odefunc_kernel, d=D, tile_b=tb, true_b=B, inv_b=1.0 / B,
        needs_mask=needs_mask)

    resident = lambda r, k: pl.BlockSpec((r, k), lambda i: (0, 0))

    dxT, dlogpT, parts = pl.pallas_call(
        kernel,
        out_shape=(
            jax.ShapeDtypeStruct((D, Bp), sdt),                 # dx^T
            jax.ShapeDtypeStruct((1, Bp), jnp.float32),         # dlogp row
            jax.ShapeDtypeStruct((grid, 2, 128), jnp.float32),  # per-tile kin/l1
        ),
        grid_spec=pltpu.PrefetchScalarGridSpec(
            num_scalar_prefetch=0,
            grid=(grid,),
            in_specs=[
                pl.BlockSpec((D, tb), lambda i: (0, i)),        # x^T tile
                resident(H, D),                                 # W1[:, :D]
                resident(H, 1),                                 # b1 + t*W1[:,D]
                resident(H, D),                                 # W2^T
                resident(D, 1),                                 # b2
                resident(H, 1),                                 # trace weights c
            ],
            out_specs=(
                pl.BlockSpec((D, tb), lambda i: (0, i)),
                pl.BlockSpec((1, tb), lambda i: (0, i)),
                pl.BlockSpec((1, 2, 128), lambda i: (i, 0, 0)),
            ),
        ),
        # no cross-tile state -> batch axis is embarrassingly parallel
        # (shards across the two TensorCores on v7x).
        compiler_params=pltpu.CompilerParams(
            dimension_semantics=("parallel",),
            vmem_limit_bytes=32 * 1024 * 1024),
    )(xT, prepped["wx"], b1_eff, prepped["w2t"], prepped["b2"], prepped["c"])

    dx = jnp.transpose(dxT[:, :B]).astype(x.dtype)         # (B, D)
    dlogp = jnp.transpose(dlogpT[:, :B])                   # (B, 1)
    dstate = (dx, dlogp)
    if len(state) > 2:
        kin = jnp.sum(parts[:, 0, 0])
        l1 = jnp.sum(parts[:, 1, 0])
        return dstate + (kin, l1)
    return dstate


def _reference(t, x, W1, b1, W2, b2):
    B, D = x.shape
    xa = jnp.concatenate([x, jnp.full((B, 1), t, jnp.float32)], axis=1)
    pre = xa @ W1.T + b1
    a = jnp.tanh(pre)
    dx = a @ W2.T + b2
    c = jnp.sum(W1[:, :D] * W2.T, axis=1)
    div = (1.0 - a * a) @ c
    dlogp = -div[:, None]
    kin = 0.5 * jnp.mean(jnp.sum(dx * dx, axis=1))
    l1 = jnp.mean(jnp.sum(jnp.abs(dx), axis=1))
    return dx, dlogp, kin, l1


if __name__ == "__main__":
    D, H = 4, 32
    key = jax.random.PRNGKey(0)
    k1, k2, k3, k4, k5, k6, k7 = jax.random.split(key, 7)

    # deterministic wrapped-odefunc weights
    W1 = 0.3 * jax.random.normal(k1, (H, D + 1), jnp.float32)
    b1 = 0.1 * jax.random.normal(k2, (H,), jnp.float32)
    W2 = 0.3 * jax.random.normal(k3, (D, H), jnp.float32)
    b2 = 0.1 * jax.random.normal(k4, (D,), jnp.float32)
    prepped = prepare_params((W1, b1, W2, b2))
    t = jnp.float32(0.5)

    # --- path 1: f32, multi-tile (grid=2), reg states present -------------
    B = 256
    x = jax.random.normal(k5, (B, D), jnp.float32)
    logp = jax.random.normal(k6, (B, 1), jnp.float32)
    state = (x, logp, jnp.float32(0.0), jnp.float32(0.0))
    dx, dlogp, kin, l1 = jax.block_until_ready(
        regularized_odefunc_forward(t, state, prepped, tile_b=128))

    rdx, rdlogp, rkin, rl1 = _reference(t, x, W1, b1, W2, b2)
    assert dx.shape == (B, D) and dlogp.shape == (B, 1)
    assert jnp.allclose(dx, rdx, atol=1e-4), "dx mismatch"
    assert jnp.allclose(dlogp, rdlogp, atol=1e-4), "dlogp mismatch"
    assert jnp.allclose(kin, rkin, atol=1e-4), "kinetic reg mismatch"
    assert jnp.allclose(l1, rl1, atol=1e-4), "l1 reg mismatch"

    # --- path 2: no reg states -> only (dx, dlogp) -------------------------
    out2 = jax.block_until_ready(
        regularized_odefunc_forward(t, (x, logp), prepped, tile_b=128))
    assert len(out2) == 2 and jnp.allclose(out2[0], rdx, atol=1e-4)

    # --- path 3: ragged batch + bf16 streaming (masked last tile) ----------
    Br = 200
    xr = jax.random.normal(k7, (Br, D), jnp.float32)
    lr = jnp.zeros((Br, 1), jnp.float32)
    st3 = (xr, lr, jnp.float32(0.0), jnp.float32(0.0))
    dx3, dlogp3, kin3, l13 = jax.block_until_ready(
        regularized_odefunc_forward(t, st3, prepped, tile_b=128,
                                    stream_dtype=jnp.bfloat16))
    r3 = _reference(t, xr, W1, b1, W2, b2)
    assert dx3.shape == (Br, D) and dlogp3.shape == (Br, 1)
    assert jnp.allclose(dx3, r3[0], atol=5e-2), "bf16 dx mismatch"
    assert jnp.allclose(dlogp3, r3[1], atol=5e-2), "bf16 dlogp mismatch"
    assert jnp.allclose(kin3, r3[2], atol=5e-2), "bf16 kin mismatch"
    assert jnp.allclose(l13, r3[3], atol=5e-2), "bf16 l1 mismatch"

    print("KERNEL_OK")
</pallas_src>

<mosaic_0001>
module attributes {stable_mosaic.version = 11 : i64} {
  func.func @_reg_odefunc_kernel(%arg0: i32, %arg1: memref<4x128xf32, #tpu.memory_space<vmem>>, %arg2: memref<32x4xf32, #tpu.memory_space<vmem>>, %arg3: memref<32x1xf32, #tpu.memory_space<vmem>>, %arg4: memref<32x4xf32, #tpu.memory_space<vmem>>, %arg5: memref<4x1xf32, #tpu.memory_space<vmem>>, %arg6: memref<32x1xf32, #tpu.memory_space<vmem>>, %arg7: memref<4x128xf32, #tpu.memory_space<vmem>>, %arg8: memref<1x128xf32, #tpu.memory_space<vmem>>, %arg9: memref<1x2x128xf32, #tpu.memory_space<vmem>>) attributes {dimension_semantics = [#tpu.dimension_semantics<parallel>], iteration_bounds = array<i64: 2>, scalar_prefetch = 0 : i64, scratch_operands = 0 : i64, tpu.core_type = #tpu.core_type<tc>, window_params = [{transform_indices = @transform_0, window_bounds = array<i64: 4, 128>}, {pipeline_mode = #tpu.pipeline_mode<synchronous>, transform_indices = @transform_1, window_bounds = array<i64: 32, 4>}, {pipeline_mode = #tpu.pipeline_mode<synchronous>, transform_indices = @transform_2, window_bounds = array<i64: 32, 1>}, {pipeline_mode = #tpu.pipeline_mode<synchronous>, transform_indices = @transform_3, window_bounds = array<i64: 32, 4>}, {pipeline_mode = #tpu.pipeline_mode<synchronous>, transform_indices = @transform_4, window_bounds = array<i64: 4, 1>}, {pipeline_mode = #tpu.pipeline_mode<synchronous>, transform_indices = @transform_5, window_bounds = array<i64: 32, 1>}, {transform_indices = @transform_6, window_bounds = array<i64: 4, 128>}, {transform_indices = @transform_7, window_bounds = array<i64: 1, 128>}, {transform_indices = @transform_8, window_bounds = array<i64: 1, 2, 128>}]} {
    %c0 = arith.constant 0 : index
    %c0_0 = arith.constant 0 : index
    %0 = vector.load %arg1[%c0, %c0_0] : memref<4x128xf32, #tpu.memory_space<vmem>>, vector<4x128xf32>
    %c0_1 = arith.constant 0 : index
    %c0_2 = arith.constant 0 : index
    %1 = vector.load %arg2[%c0_1, %c0_2] : memref<32x4xf32, #tpu.memory_space<vmem>>, vector<32x4xf32>
    %c0_3 = arith.constant 0 : index
    %c0_4 = arith.constant 0 : index
    %2 = vector.load %arg4[%c0_3, %c0_4] : memref<32x4xf32, #tpu.memory_space<vmem>>, vector<32x4xf32>
    %3 = vector.extract_strided_slice %1 {offsets = [0, 0], sizes = [32, 1], strides = [1, 1]} : vector<32x4xf32> to vector<32x1xf32>
    %4 = vector.extract_strided_slice %0 {offsets = [0, 0], sizes = [1, 128], strides = [1, 1]} : vector<4x128xf32> to vector<1x128xf32>
    %5 = vector.broadcast %3 : vector<32x1xf32> to vector<32x128xf32>
    %6 = vector.broadcast %4 : vector<1x128xf32> to vector<32x128xf32>
    %7 = arith.mulf %5, %6 : vector<32x128xf32>
    %8 = vector.extract_strided_slice %1 {offsets = [0, 1], sizes = [32, 1], strides = [1, 1]} : vector<32x4xf32> to vector<32x1xf32>
    %9 = vector.extract_strided_slice %0 {offsets = [1, 0], sizes = [1, 128], strides = [1, 1]} : vector<4x128xf32> to vector<1x128xf32>
    %10 = vector.broadcast %8 : vector<32x1xf32> to vector<32x128xf32>
    %11 = vector.broadcast %9 : vector<1x128xf32> to vector<32x128xf32>
    %12 = arith.mulf %10, %11 : vector<32x128xf32>
    %13 = arith.addf %7, %12 : vector<32x128xf32>
    %14 = vector.extract_strided_slice %1 {offsets = [0, 2], sizes = [32, 1], strides = [1, 1]} : vector<32x4xf32> to vector<32x1xf32>
    %15 = vector.extract_strided_slice %0 {offsets = [2, 0], sizes = [1, 128], strides = [1, 1]} : vector<4x128xf32> to vector<1x128xf32>
    %16 = vector.broadcast %14 : vector<32x1xf32> to vector<32x128xf32>
    %17 = vector.broadcast %15 : vector<1x128xf32> to vector<32x128xf32>
    %18 = arith.mulf %16, %17 : vector<32x128xf32>
    %19 = arith.addf %13, %18 : vector<32x128xf32>
    %20 = vector.extract_strided_slice %1 {offsets = [0, 3], sizes = [32, 1], strides = [1, 1]} : vector<32x4xf32> to vector<32x1xf32>
    %21 = vector.extract_strided_slice %0 {offsets = [3, 0], sizes = [1, 128], strides = [1, 1]} : vector<4x128xf32> to vector<1x128xf32>
    %22 = vector.broadcast %20 : vector<32x1xf32> to vector<32x128xf32>
    %23 = vector.broadcast %21 : vector<1x128xf32> to vector<32x128xf32>
    %24 = arith.mulf %22, %23 : vector<32x128xf32>
    %25 = arith.addf %19, %24 : vector<32x128xf32>
    %c0_5 = arith.constant 0 : index
    %c0_6 = arith.constant 0 : index
    %26 = vector.load %arg3[%c0_5, %c0_6] : memref<32x1xf32, #tpu.memory_space<vmem>>, vector<32x1xf32>
    %27 = vector.broadcast %26 : vector<32x1xf32> to vector<32x128xf32>
    %28 = arith.addf %25, %27 : vector<32x128xf32>
    %29 = math.tanh %28 : vector<32x128xf32>
    %30 = vector.extract_strided_slice %2 {offsets = [0, 0], sizes = [32, 1], strides = [1, 1]} : vector<32x4xf32> to vector<32x1xf32>
    %31 = vector.broadcast %30 : vector<32x1xf32> to vector<32x128xf32>
    %32 = arith.mulf %31, %29 : vector<32x128xf32>
    %cst = arith.constant dense<0.000000e+00> : vector<128xf32>
    %33 = vector.multi_reduction <add>, %32, %cst [0] : vector<32x128xf32> to vector<128xf32>
    %34 = vector.shape_cast %33 : vector<128xf32> to vector<1x128xf32>
    %35 = vector.extract_strided_slice %2 {offsets = [0, 1], sizes = [32, 1], strides = [1, 1]} : vector<32x4xf32> to vector<32x1xf32>
    %36 = vector.broadcast %35 : vector<32x1xf32> to vector<32x128xf32>
    %37 = arith.mulf %36, %29 : vector<32x128xf32>
    %cst_7 = arith.constant dense<0.000000e+00> : vector<128xf32>
    %38 = vector.multi_reduction <add>, %37, %cst_7 [0] : vector<32x128xf32> to vector<128xf32>
    %39 = vector.shape_cast %38 : vector<128xf32> to vector<1x128xf32>
    %40 = vector.extract_strided_slice %2 {offsets = [0, 2], sizes = [32, 1], strides = [1, 1]} : vector<32x4xf32> to vector<32x1xf32>
    %41 = vector.broadcast %40 : vector<32x1xf32> to vector<32x128xf32>
    %42 = arith.mulf %41, %29 : vector<32x128xf32>
    %cst_8 = arith.constant dense<0.000000e+00> : vector<128xf32>
    %43 = vector.multi_reduction <add>, %42, %cst_8 [0] : vector<32x128xf32> to vector<128xf32>
    %44 = vector.shape_cast %43 : vector<128xf32> to vector<1x128xf32>
    %45 = vector.extract_strided_slice %2 {offsets = [0, 3], sizes = [32, 1], strides = [1, 1]} : vector<32x4xf32> to vector<32x1xf32>
    %46 = vector.broadcast %45 : vector<32x1xf32> to vector<32x128xf32>
    %47 = arith.mulf %46, %29 : vector<32x128xf32>
    %cst_9 = arith.constant dense<0.000000e+00> : vector<128xf32>
    %48 = vector.multi_reduction <add>, %47, %cst_9 [0] : vector<32x128xf32> to vector<128xf32>
    %49 = vector.shape_cast %48 : vector<128xf32> to vector<1x128xf32>
    %50 = tpu.concatenate %34, %39, %44, %49 in 0 : vector<1x128xf32>, vector<1x128xf32>, vector<1x128xf32>, vector<1x128xf32> -> vector<4x128xf32>
    %c0_10 = arith.constant 0 : index
    %c0_11 = arith.constant 0 : index
    %51 = vector.load %arg5[%c0_10, %c0_11] : memref<4x1xf32, #tpu.memory_space<vmem>>, vector<4x1xf32>
    %52 = vector.broadcast %51 : vector<4x1xf32> to vector<4x128xf32>
    %53 = arith.addf %50, %52 : vector<4x128xf32>
    %54 = arith.mulf %29, %29 : vector<32x128xf32>
    %cst_12 = arith.constant 1.000000e+00 : f32
    %55 = vector.broadcast %cst_12 : f32 to vector<32x128xf32>
    %56 = arith.subf %55, %54 : vector<32x128xf32>
    %c0_13 = arith.constant 0 : index
    %c0_14 = arith.constant 0 : index
    %57 = vector.load %arg6[%c0_13, %c0_14] : memref<32x1xf32, #tpu.memory_space<vmem>>, vector<32x1xf32>
    %58 = vector.broadcast %57 : vector<32x1xf32> to vector<32x128xf32>
    %59 = arith.mulf %56, %58 : vector<32x128xf32>
    %cst_15 = arith.constant dense<0.000000e+00> : vector<128xf32>
    %60 = vector.multi_reduction <add>, %59, %cst_15 [0] : vector<32x128xf32> to vector<128xf32>
    %61 = vector.shape_cast %60 : vector<128xf32> to vector<1x128xf32>
    %c0_16 = arith.constant 0 : index
    %c0_17 = arith.constant 0 : index
    %62 = vector.load %arg7[%c0_16, %c0_17] : memref<4x128xf32, #tpu.memory_space<vmem>>, vector<4x128xf32>
    tpu.vector_store %arg7[%c0_16, %c0_17], %53 {strides = array<i32>} : memref<4x128xf32, #tpu.memory_space<vmem>>, vector<4x128xf32>,
    %cst_18 = arith.constant 0.000000e+00 : f32
    %63 = vector.broadcast %cst_18 : f32 to vector<1x128xf32>
    %64 = arith.subf %63, %61 : vector<1x128xf32>
    %c0_19 = arith.constant 0 : index
    %c0_20 = arith.constant 0 : index
    %65 = vector.load %arg8[%c0_19, %c0_20] : memref<1x128xf32, #tpu.memory_space<vmem>>, vector<1x128xf32>
    tpu.vector_store %arg8[%c0_19, %c0_20], %64 {strides = array<i32>} : memref<1x128xf32, #tpu.memory_space<vmem>>, vector<1x128xf32>,
    %66 = arith.mulf %53, %53 : vector<4x128xf32>
    %67 = math.absf %53 : vector<4x128xf32>
    %68 = vector.shape_cast %66 : vector<4x128xf32> to vector<1x4x128xf32>
    %cst_21 = arith.constant dense<0.000000e+00> : vector<1xf32>
    %69 = vector.multi_reduction <add>, %68, %cst_21 [1, 2] : vector<1x4x128xf32> to vector<1xf32>
    %70 = vector.shape_cast %69 : vector<1xf32> to vector<1x1x1xf32>
    %71 = vector.extract %70[0, 0, 0] : f32 from vector<1x1x1xf32>
    %cst_22 = arith.constant 0.001953125 : f32
    %72 = arith.mulf %cst_22, %71 : f32
    %73 = vector.shape_cast %67 : vector<4x128xf32> to vector<1x4x128xf32>
    %cst_23 = arith.constant dense<0.000000e+00> : vector<1xf32>
    %74 = vector.multi_reduction <add>, %73, %cst_23 [1, 2] : vector<1x4x128xf32> to vector<1xf32>
    %75 = vector.shape_cast %74 : vector<1xf32> to vector<1x1x1xf32>
    %76 = vector.extract %75[0, 0, 0] : f32 from vector<1x1x1xf32>
    %cst_24 = arith.constant 3.906250e-03 : f32
    %77 = arith.mulf %cst_24, %76 : f32
    %78 = tpu.iota {dimensions = array<i32: 1>} : vector<1x2x128xi32>
    %c0_i32 = arith.constant 0 : i32
    %79 = vector.broadcast %c0_i32 : i32 to vector<1x2x128xi32>
    %80 = arith.cmpi eq, %78, %79 : vector<1x2x128xi32>
    %81 = vector.broadcast %72 : f32 to vector<1x2x128xf32>
    %82 = vector.broadcast %77 : f32 to vector<1x2x128xf32>
    %83 = arith.select %80, %81, %82 : vector<1x2x128xi1>, vector<1x2x128xf32>
    %c0_25 = arith.constant 0 : index
    %c0_26 = arith.constant 0 : index
    %c0_27 = arith.constant 0 : index
    %84 = vector.load %arg9[%c0_25, %c0_26, %c0_27] : memref<1x2x128xf32, #tpu.memory_space<vmem>>, vector<1x2x128xf32>
    tpu.vector_store %arg9[%c0_25, %c0_26, %c0_27], %83 {strides = array<i32>} : memref<1x2x128xf32, #tpu.memory_space<vmem>>, vector<1x2x128xf32>,
    return
  }
  func.func @transform_0(%arg0: i32) -> (i32, i32) {
    %c0_i32 = arith.constant 0 : i32
    %c0_i32_0 = arith.constant 0 : i32
    return %c0_i32, %arg0 : i32, i32
  }
  func.func @transform_1(%arg0: i32) -> (i32, i32) {
    %c0_i32 = arith.constant 0 : i32
    %c0_i32_0 = arith.constant 0 : i32
    %c0_i32_1 = arith.constant 0 : i32
    return %c0_i32, %c0_i32_0 : i32, i32
  }
  func.func @transform_2(%arg0: i32) -> (i32, i32) {
    %c0_i32 = arith.constant 0 : i32
    %c0_i32_0 = arith.constant 0 : i32
    %c0_i32_1 = arith.constant 0 : i32
    return %c0_i32, %c0_i32_0 : i32, i32
  }
  func.func @transform_3(%arg0: i32) -> (i32, i32) {
    %c0_i32 = arith.constant 0 : i32
    %c0_i32_0 = arith.constant 0 : i32
    %c0_i32_1 = arith.constant 0 : i32
    return %c0_i32, %c0_i32_0 : i32, i32
  }
  func.func @transform_4(%arg0: i32) -> (i32, i32) {
    %c0_i32 = arith.constant 0 : i32
    %c0_i32_0 = arith.constant 0 : i32
    %c0_i32_1 = arith.constant 0 : i32
    return %c0_i32, %c0_i32_0 : i32, i32
  }
  func.func @transform_5(%arg0: i32) -> (i32, i32) {
    %c0_i32 = arith.constant 0 : i32
    %c0_i32_0 = arith.constant 0 : i32
    %c0_i32_1 = arith.constant 0 : i32
    return %c0_i32, %c0_i32_0 : i32, i32
  }
  func.func @transform_6(%arg0: i32) -> (i32, i32) {
    %c0_i32 = arith.constant 0 : i32
    %c0_i32_0 = arith.constant 0 : i32
    return %c0_i32, %arg0 : i32, i32
  }
  func.func @transform_7(%arg0: i32) -> (i32, i32) {
    %c0_i32 = arith.constant 0 : i32
    %c0_i32_0 = arith.constant 0 : i32
    return %c0_i32, %arg0 : i32, i32
  }
  func.func @transform_8(%arg0: i32) -> (i32, i32, i32) {
    %c0_i32 = arith.constant 0 : i32
    %c0_i32_0 = arith.constant 0 : i32
    %c0_i32_1 = arith.constant 0 : i32
    return %arg0, %c0_i32, %c0_i32_0 : i32, i32, i32
  }
}

</mosaic_0001>

<bundles_post_ra>
// kernel: tpu_custom_call.1
= control target key start
LH: loop header
LB: loop body
LE: loop exit
PB: predicated region body
PF: predicated region fallthrough
CT: control target
= control target key end

     0   :  { %s1402_s0 = inlined_call_operand.vmem [shape: f32[4,256], index: 0, kind: input, shape index: {}]   ;;  %s1403_s1 = inlined_call_operand.vmem [shape: f32[32,4], index: 1, kind: input, shape index: {}]   ;;  %s1404_s2 = inlined_call_operand.vmem [shape: f32[32,1], index: 2, kind: input, shape index: {}]   ;;  %s1405_s3 = inlined_call_operand.vmem [shape: f32[32,4], index: 3, kind: input, shape index: {}]   ;;  %s1406_s4 = inlined_call_operand.vmem [shape: f32[4,1], index: 4, kind: input, shape index: {}]   ;;  %s1407_s5 = inlined_call_operand.vmem [shape: f32[32,1], index: 5, kind: input, shape index: {}]   ;;  %s1408_s6 = inlined_call_operand.hbm [shape: f32[4,256], index: 6, kind: output, shape index: {0}]   ;;  %s1409_s7 = inlined_call_operand.hbm [shape: f32[1,256], index: 7, kind: output, shape index: {1}]   ;;  %s1410_s8 = inlined_call_operand.hbm [shape: f32[2,2,128], index: 8, kind: output, shape index: {2}]  }
   0x1   :  { %1412 = sst [smem:[#allocation9_spill]] %s1402_s0 }
   0x2   :  { %1413 = sst [smem:[#allocation10_spill]] %s1403_s1 }
   0x3   :  { %14 = vsyncpa [#allocation3], 0 }
   0x4   :  { %16 = vsyncpa [#allocation3 + $0x1], 0 }
   0x5   :  { %17 = vsyncpa [#allocation5], 0 }
   0x6   :  { %19 = vsyncpa [#allocation5 + $0x1], 0  ;;  %s1127_s27 = smov 0   ;;  %s1129_s28 = smov 0  }
   0x7   :  { %s1131_s29 = smov 0   ;;  %s1133_s30 = smov 0  }
   0x8 LB: > { %s1148_s9 = sadd.s32 4294967295, %s1073_s30   ;;  %s1411_s10 = sadd.s32 4294967294, %s1073_s30   ;;  %s1073_s30 = sphi %s1133_s30, %s1422_s30   ;;  %s1069_s29 = sphi %s1131_s29, %s1421_s29   ;;  %s1065_s28 = sphi %s1129_s28, %s1420_s28   ;;  %s1061_s27 = sphi %s1127_s27, %s1419_s27  }
   0x9   : > { %s1152_s11 = sadd.s32 1, %s1073_s30   ;;  %s163_s12 = sadd.s32 1, %s1069_s29 }
   0xa   : > { %s160_s13 = ssub.s32 %s1073_s30, %s1152_s11  ;;  %p173_p0 = scmp.ne.s32.totalorder %s1069_s29, %s1065_s28 }
   0xb   : > { %p161_p1 = scmp.eq.s32.totalorder %s160_s13, 0  ;;  %p174_p2 = scmp.eq.s32.totalorder %s1148_s9, 1 }
   0xc   : > { %p179_p3 = scmp.ne.s32.totalorder %s1065_s28, %s1061_s27  ;;  %p180_p4 = scmp.eq.s32.totalorder %s1411_s10, 1 }
   0xd   : > { %s1165_s14 = scalar_select %p161_p1, %s1069_s29, %s163_s12  }
   0xe   : > { %p1167_p5 = por %p174_p2, %p173_p0  ;;  %p1171_p6 = por %p180_p4, %p179_p3 }
   0xf   : > { %p852_p7 = scmp.ge.s32.totalorder %s1073_s30, 1  ;;  %p272_p8 = scmp.lt.s32.totalorder %s1073_s30, 3 }
  0x11   : > { %p273_p9 = pnand %p852_p7, %p272_p8 }
  0x12   : > { %s1416_s1 = sld [smem:[#allocation10_spill]] (!%p273_p9)  ;;  %v1075_v1 = vmov (!%p273_p9), 2   ;;  %v1076_v2 = vmov (!%p273_p9), 1   ;;  %v323_v6 = vld [vmem:[%s1405_s3] sm:$0xff] (!%p273_p9)  ;;  %v1077_v7 = vmov (!%p273_p9), 3   ;;  %v1078_v8 = vmov (!%p273_p9), 0  }
  0x13   : > { %276 = sbr.rel (%p273_p9) target bundleno = 497 (0x1f1), region = 44  ;;  %921 = vset.pattern.permute.xlu0 (!%p273_p9), %v1075_v1  ;;  %920 = vset.pattern.permute.xlu1 (!%p273_p9), %v1076_v2  ;;  %v440_v9 = vld [vmem:[%s1404_s2 + $0x8] sm:$0xff] (!%p273_p9)  ;;  %v439_v10 = vld [vmem:[%s1404_s2] sm:$0xff] (!%p273_p9)  ;;  %v326_v11 = vld [vmem:[%s1405_s3 + $0x18] sm:$0xff] (!%p273_p9)  ;;  %p314_p10 = scmp.lt.s32.totalorder (!%p273_p9), %s1148_s9, 1  ;;  %v347_v30 = vlaneseq (!%p273_p9)  ;;  %vm591_vm0 = vcmask (!%p273_p9), 1040384  }
  0x14   : > { %v441_v12 = vld [vmem:[%s1404_s2 + $0x10] sm:$0xff] (!%p273_p9)  ;;  %v442_v13 = vld [vmem:[%s1404_s2 + $0x18] sm:$0xff] (!%p273_p9)  ;;  %v324_v14 = vld [vmem:[%s1405_s3 + $0x8] sm:$0xff] (!%p273_p9)  ;;  %s1417_s0 = sld [smem:[#allocation9_spill]] (!%p273_p9)  ;;  %s1270_s24 = sand.u32 (!%p273_p9), 1, %s1065_s28   ;;  %vm593_vm1 = vcmask (!%p273_p9), 1041408  }
  0x15   : > { %v325_v15 = vld [vmem:[%s1405_s3 + $0x10] sm:$0xff] (!%p273_p9)  ;;  %v597_v16 = vld [vmem:[%s1406_s4] sm:$0xf] (!%p273_p9)  ;;  %v1234_v33 = vshrl.u32 (!%p273_p9), %v347_v30, 7  ;;  %vm595_vm2 = vcmask (!%p273_p9), 1042432   ;;  %s853_s25 = sshll.u32 (!%p273_p9), %s1270_s24, 2 }
  0x16   : > { %vm654_vm3 = vcmask (!%p273_p9), 1043456   ;;  %s300_s26 = scalar_lea.vmem (!%p273_p9), [#allocation2], %s853_s25  ;;  %s685_s17 = scalar_lea.sflag (!%p273_p9), [#allocation3], %s1270_s24 }
  0x17   : > { %v373_v35 = vsub.s32 (!%p273_p9), 1, %v1234_v33  ;;  %v349_v36 = vsub.s32 (!%p273_p9), 0, %v1234_v33  ;;  %v401_v40 = vsub.s32 (!%p273_p9), 2, %v1234_v33  ;;  %v429_v49 = vsub.s32 (!%p273_p9), 3, %v1234_v33  ;;  %s707_s10 = sshll.u32 (!%p273_p9), %s300_s26, 4  ;;  %s708_s10 = int_to_ptr.vmem [resolvable:$true] %s707_s10 }
  0x18   : > { %v319_v0 = vld [vmem:[%s1416_s1] sm:$0xff] (!%p273_p9)  ;;  %v320_v3 = vld [vmem:[%s1416_s1 + $0x8] sm:$0xff] (!%p273_p9)  ;;  %v322_v4 = vld [vmem:[%s1416_s1 + $0x18] sm:$0xff] (!%p273_p9)  ;;  %s951_s18 = scalar_lea.vmem (!%p273_p9), %s708_s10, 64 }
  0x19   : > { %384 = vperm.xlu0 (!%p273_p9), %921, %v319_v0   ;;  %356 = vperm.xlu1 (!%p273_p9), %920, %v319_v0   ;;  %v321_v5 = vld [vmem:[%s1416_s1 + $0x10] sm:$0xff] (!%p273_p9)  ;;  %p952_p11 = scmp.ne.s32.totalorder (!%p273_p9), %s708_s10, %s951_s18 }
  0x1a   : > { %s315_s19 = scalar_select %p314_p10, %s1148_s9, 1 }
  0x1b   : > { %p953_p12 = pnand %p952_p11, %p1167_p5 }
  0x1c   : > { %s855_s20 = sshll.u32 %s315_s19, 2  ;;  %s1079_s19 = smov [#allocation2]  }
  0x1d   : > { %924 = vset.pattern.permute.xlu0 %v1076_v2  ;;  %360 = vperm.xlu1 %920, %v320_v3   ;;  %s317_s23 = scalar_lea.vmem %s1417_s0, %s855_s20  ;;  %p954_p13 = pneg %p953_p12 }
  0x1e   : > { %368 = vperm.xlu0 %924, %v322_v4   ;;  %v318_v37 = vld [vmem:[%s317_s23] sm:$0xf]  ;;  %s858_s23 = sshll.u32 %s1148_s9, 6  ;;  %s955_s20 = sshll.u32 %s1079_s19, 4  ;;  %s956_s20 = int_to_ptr.vmem [resolvable:$false] %s955_s20 }
  0x1f   : > { %v374_v39 = vrot.slane %v318_v37, %v373_v35  ;;  %v350_v41 = vrot.slane %v318_v37, %v349_v36  ;;  %v402_v47 = vrot.slane %v318_v37, %v401_v40  ;;  %v430_v57 = vrot.slane %v318_v37, %v429_v49  ;;  %s1289_s13 = scalar_lea.hbm %s1408_s6, %s858_s23  ;;  %s957_s21 = scalar_lea.vmem %s956_s20, 128 }
  0x20   : > { %p958_p0 = scmp.lt.s32.totalorder %s708_s10, %s956_s20  ;;  %p959_p1 = scmp.lt.s32.totalorder %s957_s21, %s951_s18 }
  0x21   : > { %364 = vperm.xlu1 %920, %v321_v5  }
  0x22   : > { %505 = vperm.xlu0 %924, %v323_v6   ;;  %p960_p2 = por %p959_p1, %p958_p0 }
  0x24   : > { %p961_p3 = pnand %p960_p2, %p954_p13 }
  0x25   : > { %922 = vset.pattern.permute.xlu1 %v1075_v1 }
  0x26   : > { %930 = vset.pattern.permute.xlu0 %v1077_v7  ;;  %388 = vperm.xlu1 %922, %v320_v3  }
  0x27   : > { %416 = vperm.xlu0 %930, %v320_v3  }
  0x2a   : > { %923 = vset.pattern.permute.xlu1 %v1078_v8 }
  0x2b   : > { %424 = vperm.xlu0 %930, %v322_v4   ;;  %344 = vperm.xlu1 %923, %v322_v4  }
  0x2f   : > { %563 = vperm.xlu0 %930, %v323_v6   ;;  %925 = vset.pattern.permute.xlu1 %v1075_v1 }
  0x30   : > { %392 = vperm.xlu1 %925, %v321_v5  }
  0x33   : > { %935 = vset.pattern.permute.xlu0 %v1078_v8 }
  0x34   : > { %329 = vperm.xlu0 %935, %v319_v0   ;;  %926 = vset.pattern.permute.xlu1 %v1077_v7 }
  0x35   : > { %412 = vperm.xlu1 %926, %v319_v0  }
  0x38   : > { %334 = vperm.xlu0 %935, %v320_v3  }
  0x39   : > { %927 = vset.pattern.permute.xlu1 %v1075_v1 }
  0x3a   : > { %396 = vperm.xlu1 %927, %v322_v4  }
  0x3c   : > { %339 = vperm.xlu0 %935, %v321_v5  }
  0x3e   : > { %928 = vset.pattern.permute.xlu1 %v1077_v7 }
  0x3f   : > { %420 = vperm.xlu1 %928, %v321_v5  }
  0x40   : > { %450 = vperm.xlu0 %935, %v440_v9  }
  0x43   : > { %929 = vset.pattern.permute.xlu1 %v1078_v8 }
  0x44   : > { %473 = vperm.xlu0 %935, %v323_v6   ;;  %445 = vperm.xlu1 %929, %v439_v10  }
  0x48   : > { %488 = vperm.xlu0 %935, %v326_v11   ;;  %455 = vperm.xlu1 %929, %v441_v12  }
  0x4c   : > { %938 = vset.pattern.permute.xlu0 %v1075_v1  ;;  %460 = vperm.xlu1 %929, %v442_v13  }
  0x4d   : > { %538 = vperm.xlu0 %938, %v324_v14  }
  0x50   : > { %478 = vperm.xlu1 %929, %v324_v14  }
  0x51   : > { %546 = vperm.xlu0 %938, %v326_v11  }
  0x54   : > { %931 = vset.pattern.permute.xlu1 %v1076_v2 }
  0x55   : > { %509 = vperm.xlu1 %931, %v324_v14   ;;  %942 = vset.pattern.permute.xlu0 %v1078_v8 }
  0x59   : > { %932 = vset.pattern.permute.xlu1 %v1075_v1 }
  0x5a   : > { %534 = vperm.xlu1 %932, %v323_v6  }
  0x5e   : > { %933 = vset.pattern.permute.xlu1 %v1078_v8 }
  0x5f   : > { %483 = vperm.xlu1 %933, %v325_v15  }
  0x63   : > { %934 = vset.pattern.permute.xlu1 %v1076_v2 }
  0x64   : > { %513 = vperm.xlu1 %934, %v325_v15  }
  0x68   : > { %936 = vset.pattern.permute.xlu1 %v1077_v7 }
  0x69   : > { %567 = vperm.xlu1 %936, %v324_v14  }
  0x6d   : > { %937 = vset.pattern.permute.xlu1 %v1075_v1 }
  0x6e   : > { %542 = vperm.xlu1 %937, %v325_v15  }
  0x72   : > { %939 = vset.pattern.permute.xlu1 %v1076_v2 }
  0x73   : > { %517 = vperm.xlu1 %939, %v326_v11  }
  0x77   : > { %940 = vset.pattern.permute.xlu1 %v1077_v7 }
  0x78   : > { %571 = vperm.xlu1 %940, %v325_v15  }
  0x7c   : > { %575 = vperm.xlu1 %940, %v326_v11  }
  0x80   : > { %941 = vset.pattern.permute.xlu1 %v1078_v8 }
  0x81   : > { %600 = vperm.xlu1 %941, %v597_v16  }
  0x98   : > { %v357_v17 = vpop.permute.xlu1 %356  ;;  %v385_v18 = vpop.permute.xlu0 %384 }
  0x99   : > { %v375_v46 = vmul.f32 %v374_v39, %v357_v17  ;;  %v403_v51 = vmul.f32 %v402_v47, %v385_v18 }
  0x9c   : > { %v361_v19 = vpop.permute.xlu1 %360 }
  0x9d   : > { %v369_v20 = vpop.permute.xlu0 %368  ;;  %v376_v48 = vmul.f32 %v374_v39, %v361_v19 }
  0x9e   : > { %v378_v63 = vmul.f32 %v374_v39, %v369_v20 }
  0xa0   : > { %v365_v21 = vpop.permute.xlu1 %364 }
  0xa1   : > { %v1228_v22 = vpop.permute.xlu0 %505  ;;  %v377_v55 = vmul.f32 %v374_v39, %v365_v21 }
  0xa5   : > { %v389_v23 = vpop.permute.xlu1 %388 }
  0xa6   : > { %v417_v24 = vpop.permute.xlu0 %416  ;;  %v404_v56 = vmul.f32 %v402_v47, %v389_v23 }
  0xa7   : > { %v432_v59 = vmul.f32 %v430_v57, %v417_v24 }
  0xaa   : > { %v345_v25 = vpop.permute.xlu1 %344  ;;  %v425_v26 = vpop.permute.xlu0 %424 }
  0xab   : > { %v354_v0 = vmul.f32 %v350_v41, %v345_v25  ;;  %v434_v13 = vmul.f32 %v430_v57, %v425_v26 }
  0xad   : > { %v382_v10 = vadd.f32 %v378_v63, %v354_v0 }
  0xae   : > { %v1231_v28 = vpop.permute.xlu0 %563 }
  0xaf   : > { %v393_v27 = vpop.permute.xlu1 %392 }
  0xb0   : > { %v405_v1 = vmul.f32 %v402_v47, %v393_v27 }
  0xb3   : > { %v330_v32 = vpop.permute.xlu0 %329 }
  0xb4   : > { %v413_v29 = vpop.permute.xlu1 %412  ;;  %v351_v43 = vmul.f32 %v350_v41, %v330_v32 }
  0xb5   : > { %v431_v2 = vmul.f32 %v430_v57, %v413_v29 }
  0xb6   : > { %v379_v52 = vadd.f32 %v375_v46, %v351_v43 }
  0xb7   : > { %v335_v38 = vpop.permute.xlu0 %334 }
  0xb8   : > { %v352_v44 = vmul.f32 %v350_v41, %v335_v38  ;;  %v407_v62 = vadd.f32 %v403_v51, %v379_v52 }
  0xb9   : > { %v397_v31 = vpop.permute.xlu1 %396 }
  0xba   : > { %v380_v53 = vadd.f32 %v376_v48, %v352_v44  ;;  %v406_v4 = vmul.f32 %v402_v47, %v397_v31  ;;  %v435_v7 = vadd.f32 %v431_v2, %v407_v62 }
  0xbb   : > { %v340_v45 = vpop.permute.xlu0 %339 }
  0xbc   : > { %v353_v54 = vmul.f32 %v350_v41, %v340_v45  ;;  %v408_v61 = vadd.f32 %v404_v56, %v380_v53  ;;  %v410_v14 = vadd.f32 %v406_v4, %v382_v10 }
  0xbe   : > { %v421_v34 = vpop.permute.xlu1 %420  ;;  %v381_v60 = vadd.f32 %v377_v55, %v353_v54  ;;  %v436_v6 = vadd.f32 %v432_v59, %v408_v61  ;;  %v438_v18 = vadd.f32 %v434_v13, %v410_v14 }
  0xbf   : > { %v433_v5 = vmul.f32 %v430_v57, %v421_v34  ;;  %v451_v9 = vpop.permute.xlu0 %450 }
  0xc0   : > { %v409_v8 = vadd.f32 %v405_v1, %v381_v60  ;;  %v464_v15 = vadd.f32 %v451_v9, %v436_v6 }
  0xc2   : > { %v437_v16 = vadd.f32 %v433_v5, %v409_v8 }
  0xc3   : > { %v446_v42 = vpop.permute.xlu1 %445  ;;  %v474_v21 = vpop.permute.xlu0 %473 }
  0xc4   : > { %v463_v11 = vadd.f32 %v446_v42, %v435_v7 }
  0xc6   : > { %943 = vtanh.f32 %v463_v11 }
  0xc7   : > { %v456_v50 = vpop.permute.xlu1 %455  ;;  %945 = vtanh.f32 %v464_v15  ;;  %v489_v27 = vpop.permute.xlu0 %488 }
  0xc8   : > { %v465_v17 = vadd.f32 %v456_v50, %v437_v16 }
  0xca   : > { %947 = vtanh.f32 %v465_v17 }
  0xcb   : > { %v461_v58 = vpop.permute.xlu1 %460 }
  0xcc   : > { %v466_v20 = vadd.f32 %v461_v58, %v438_v18  ;;  %v539_v37 = vpop.permute.xlu0 %538 }
  0xce   : > { %949 = vtanh.f32 %v466_v20 }
  0xcf   : > { %v479_v3 = vpop.permute.xlu1 %478 }
  0xd0   : > { %v1243_v24 = vpop.eup %943  ;;  %v547_v43 = vpop.permute.xlu0 %546 }
  0xd1   : > { %v1245_v25 = vpop.eup %945  ;;  %v491_v26 = vmul.f32 %v1243_v24, %v474_v21  ;;  %v520_v48 = vmul.f32 %v1243_v24, %v1228_v22  ;;  %v578_v22 = vmul.f32 %v1243_v24, %v1231_v28 }
  0xd2   : > { %v492_v30 = vmul.f32 %v1245_v25, %v479_v3  ;;  %v550_v40 = vmul.f32 %v1245_v25, %v539_v37 }
  0xd4   : > { %v510_v12 = vpop.permute.xlu1 %509  ;;  %v1249_v31 = vpop.eup %947  ;;  %v495_v34 = vadd.f32 %v492_v30, %v491_v26 }
  0xd5   : > { %v521_v42 = vmul.f32 %v1245_v25, %v510_v12 }
  0xd7   : > { %v524_v52 = vadd.f32 %v521_v42, %v520_v48  ;;  %v614_v42 = vld [vmem:[%s1407_s5 + $0x10] sm:$0xff] }
  0xd8   : > { %v1252_v36 = vpop.eup %949 }
  0xd9   : > { %v535_v19 = vpop.permute.xlu1 %534  ;;  %v494_v41 = vmul.f32 %v1252_v36, %v489_v27  ;;  %v552_v50 = vmul.f32 %v1252_v36, %v547_v43  ;;  %v612_v43 = vld [vmem:[%s1407_s5] sm:$0xff] }
  0xda   : > { %v549_v38 = vmul.f32 %v1243_v24, %v535_v19 }
  0xdc   : > { %v553_v45 = vadd.f32 %v550_v40, %v549_v38 }
  0xde   : > { %v484_v23 = vpop.permute.xlu1 %483 }
  0xdf   : > { %v493_v32 = vmul.f32 %v1249_v31, %v484_v23 }
  0xe1   : > { %v496_v39 = vadd.f32 %v495_v34, %v493_v32 }
  0xe3   : > { %v514_v29 = vpop.permute.xlu1 %513  ;;  %v497_v46 = vadd.f32 %v496_v39, %v494_v41  ;;  %v613_v41 = vld [vmem:[%s1407_s5 + $0x8] sm:$0xff] }
  0xe4   : > { %v522_v49 = vmul.f32 %v1249_v31, %v514_v29 }
  0xe5   : > { %v498_v53 = vrot.slane %v497_v46, 4 }
  0xe6   : > { %v525_v56 = vadd.f32 %v524_v52, %v522_v49 }
  0xe7   : > { %v499_v60 = vadd.f32 %v498_v53, %v497_v46 }
  0xe8   : > { %v568_v35 = vpop.permute.xlu1 %567 }
  0xe9   : > { %v579_v61 = vmul.f32 %v1245_v25, %v568_v35  ;;  %v500_v3 = vrot.slane %v499_v60, 2 }
  0xeb   : > { %v582_v4 = vadd.f32 %v579_v61, %v578_v22  ;;  %v501_v11 = vadd.f32 %v500_v3, %v499_v60 }
  0xed   : > { %v543_v44 = vpop.permute.xlu1 %542  ;;  %v502_v28 = vrot.slane %v501_v11, 1 }
  0xee   : > { %v551_v47 = vmul.f32 %v1249_v31, %v543_v44  ;;  %v615_v44 = vld [vmem:[%s1407_s5 + $0x18] sm:$0xff] }
  0xef   : > { %v503_v21 = vadd.f32 %v502_v28, %v501_v11 }
  0xf0   : > { %v554_v51 = vadd.f32 %v553_v45, %v551_v47 }
  0xf2   : > { %v555_v54 = vadd.f32 %v554_v51, %v552_v50  ;;  %v518_v55 = vpop.permute.xlu1 %517 }
  0xf3   : > { %v523_v57 = vmul.f32 %v1252_v36, %v518_v55 }
  0xf4   : > { %v556_v58 = vrot.slane %v555_v54, 4 }
  0xf5   : > { %v526_v59 = vadd.f32 %v525_v56, %v523_v57 }
  0xf6   : > { %v557_v1 = vadd.f32 %v556_v58, %v555_v54 }
  0xf7   : > { %v527_v62 = vrot.slane %v526_v59, 4  ;;  %v572_v63 = vpop.permute.xlu1 %571 }
  0xf8   : > { %v580_v0 = vmul.f32 %v1249_v31, %v572_v63  ;;  %v558_v9 = vrot.slane %v557_v1, 2 }
  0xf9   : > { %v528_v2 = vadd.f32 %v527_v62, %v526_v59 }
  0xfa   : > { %v583_v7 = vadd.f32 %v582_v4, %v580_v0  ;;  %v559_v15 = vadd.f32 %v558_v9, %v557_v1 }
  0xfb   : > { %v529_v5 = vrot.slane %v528_v2, 2  ;;  %v576_v6 = vpop.permute.xlu1 %575 }
  0xfc   : > { %v581_v8 = vmul.f32 %v1252_v36, %v576_v6  ;;  %v560_v19 = vrot.slane %v559_v15, 1 }
  0xfd   : > { %v530_v10 = vadd.f32 %v529_v5, %v528_v2 }
  0xfe   : > { %v584_v12 = vadd.f32 %v583_v7, %v581_v8  ;;  %v561_v29 = vadd.f32 %v560_v19, %v559_v15 }
  0xff   : > { %v531_v13 = vrot.slane %v530_v10, 1 }
 0x100   : > { %v585_v14 = vrot.slane %v584_v12, 4  ;;  %v601_v26 = vpop.permute.xlu1 %600 }
 0x101   : > { %v532_v17 = vadd.f32 %v531_v13, %v530_v10 }
 0x102   : > { %v586_v16 = vadd.f32 %v585_v14, %v584_v12 }
 0x103   : > { %v592_v27 = vsel %vm591_vm0, %v503_v21, %v532_v17 }
 0x104   : > { %v587_v18 = vrot.slane %v586_v16, 2  ;;  %v594_v32 = vsel %vm593_vm1, %v592_v27, %v561_v29 }
 0x106   : > { %v588_v20 = vadd.f32 %v587_v18, %v586_v16 }
 0x108   : > { %v589_v23 = vrot.slane %v588_v20, 1 }
 0x10a   : > { %v590_v30 = vadd.f32 %v589_v23, %v588_v20 }
 0x10c   : > { %v596_v34 = vsel %vm595_vm2, %v594_v32, %v590_v30 }
 0x10d   : > { %v603_v35 = vadd.f32 %v601_v26, %v596_v34 }
 0x10f   : > { %v653_v37 = vand.u32 2147483647, %v603_v35  ;;  %v652_v38 = vmul.f32 %v603_v35, %v603_v35  ;;  %649 = vst [vmem:[%s300_s26] sm:$0xf] %v603_v35 }
 0x111   : > { %v666_v39 = vsel %vm654_vm3, %v653_v37, 0.0  ;;  %v655_v40 = vsel %vm654_vm3, %v652_v38, 0.0 }
 0x112   : > { %667 = vadd.xlane.f32.xlu1 %v666_v39  ;;  %656 = vadd.xlane.f32.xlu0 %v655_v40 }
 0x123   : > { %623 = vperm.xlu1 %941, %v613_v41  }
 0x127   : > { %628 = vperm.xlu1 %941, %v614_v42  }
 0x128   : > { %618 = vperm.xlu0 %942, %v612_v43  }
 0x12b   : > { %633 = vperm.xlu1 %941, %v615_v44  }
 0x12c   : > { %964 = shalt.err (!%p961_p3)
}
 0x12d   : > { %s965_s26 = scalar_lea.hbm %s1289_s13, 64  ;;  %s969_s25 = scalar_lea.hbm %s1408_s6, 128 }
 0x12e   : > { %p966_p4 = scmp.ne.s32.totalorder %s1289_s13, %s965_s26  ;;  %p970_p9 = scmp.lt.u32.totalorder %s1289_s13, %s1408_s6 }
 0x12f   : > { %p971_p10 = scmp.lt.u32.totalorder %s969_s25, %s965_s26  ;;  %p973_p12 = scmp.lt.u32.totalorder %s965_s26, %s1289_s13 }
 0x130   : > { %p967_p7 = pnand %p966_p4, %p1167_p5 }
 0x131   : > { %p972_p11 = por %p971_p10, %p970_p9 }
 0x132   : > { %p968_p8 = pneg %p967_p7 }
 0x133   : > { %p974_p13 = por %p973_p12, %p972_p11 }
 0x135   : > { %p975_p0 = pnand %p974_p13, %p968_p8 }
 0x137   : > { %978 = shalt.err (!%p975_p0)
}
 0x138   : > { %867 = dma.vmem_to_hbm [thread:$0]  (%p1167_p5), %s708_s10, 64, %s1289_s13, %s685_s17   ;;  %v605_v51 = vmul.f32 %v1245_v25, %v1245_v25  ;;  %v604_v52 = vmul.f32 %v1243_v24, %v1243_v24  ;;  %v606_v54 = vmul.f32 %v1249_v31, %v1249_v31  ;;  %v607_v57 = vmul.f32 %v1252_v36, %v1252_v36 }
 0x139   : > { %s689_s10 = sand.u32 1, %s1148_s9   ;;  %s859_s13 = sshll.u32 %s1148_s9, 4 }
 0x13a   : > { %v609_v58 = vsub.f32 1.0, %v605_v51  ;;  %v608_v59 = vsub.f32 1.0, %v604_v52  ;;  %v610_v62 = vsub.f32 1.0, %v606_v54  ;;  %v611_v2 = vsub.f32 1.0, %v607_v57  ;;  %s306_s17 = scalar_lea.vmem [#allocation4], %s1270_s24  ;;  %s1323_s26 = scalar_lea.hbm %s1409_s7, %s859_s13 }
 0x13b   : > { %s720_s18 = sshll.u32 %s306_s17, 4  ;;  %s1327_s22 = scalar_lea.sflag [#allocation5], %s689_s10  ;;  %s1325_s18 = int_to_ptr.vmem [resolvable:$true] %s720_s18 }
 0x13c   : > { %s979_s23 = scalar_lea.vmem %s1325_s18, 16  ;;  %s1080_s25 = smov [#allocation4]  }
 0x13d   : > { %p980_p1 = scmp.ne.s32.totalorder %s1325_s18, %s979_s23  ;;  %s983_s12 = sshll.u32 %s1080_s25, 4  ;;  %s984_s12 = int_to_ptr.vmem [resolvable:$false] %s983_s12 }
 0x13e   : > { %s985_s19 = scalar_lea.vmem %s984_s12, 32  ;;  %p986_p4 = scmp.lt.s32.totalorder %s1325_s18, %s984_s12 }
 0x13f   : > { %p981_p2 = pnand %p980_p1, %p1167_p5  ;;  %p987_p7 = scmp.lt.s32.totalorder %s985_s19, %s979_s23 }
 0x141   : > { %p982_p3 = pneg %p981_p2  ;;  %p988_p8 = por %p987_p7, %p986_p4 }
 0x143   : > { %p989_p9 = pnand %p988_p8, %p982_p3 }
 0x19f   : > { %v668_v45 = vpop.xlane.xlu1 %667  ;;  %v657_v46 = vpop.xlane.xlu0 %656 }
 0x1a0   : > { %v669_v47 = vrot.slane %v668_v45, 4  ;;  %v658_v48 = vrot.slane %v657_v46, 4 }
 0x1a2   : > { %v670_v49 = vadd.f32 %v669_v47, %v668_v45  ;;  %v659_v50 = vadd.f32 %v658_v48, %v657_v46 }
 0x1a3   : > { %v624_v53 = vpop.permute.xlu1 %623 }
 0x1a4   : > { %v671_v55 = vrot.slane %v670_v49, 2  ;;  %v660_v56 = vrot.slane %v659_v50, 2  ;;  %v637_v25 = vmul.f32 %v624_v53, %v609_v58 }
 0x1a6   : > { %v661_v60 = vadd.f32 %v660_v56, %v659_v50  ;;  %v672_v61 = vadd.f32 %v671_v55, %v670_v49 }
 0x1a7   : > { %v629_v63 = vpop.permute.xlu1 %628  ;;  %v619_v22 = vpop.permute.xlu0 %618 }
 0x1a8   : > { %v636_v0 = vmul.f32 %v619_v22, %v608_v59  ;;  %v662_v1 = vrot.slane %v661_v60, 1  ;;  %v673_v24 = vrot.slane %v672_v61, 1  ;;  %v638_v3 = vmul.f32 %v629_v63, %v610_v62 }
 0x1aa   : > { %v640_v31 = vadd.f32 %v637_v25, %v636_v0  ;;  %v663_v4 = vadd.f32 %v662_v1, %v661_v60  ;;  %v674_v5 = vadd.f32 %v673_v24, %v672_v61 }
 0x1ab   : > { %v634_v36 = vpop.permute.xlu1 %633 }
 0x1ac   : > { %v639_v6 = vmul.f32 %v634_v36, %v611_v2  ;;  %v641_v7 = vadd.f32 %v640_v31, %v638_v3  ;;  %863 = vpush %v663_v4 }
 0x1ad   : > { %865 = vpush %v674_v5 }
 0x1ae   : > { %v642_v8 = vadd.f32 %v641_v7, %v639_v6 }
 0x1b0   : > { %v643_v9 = vrot.slane %v642_v8, 4 }
 0x1b2   : > { %v644_v10 = vadd.f32 %v643_v9, %v642_v8 }
 0x1b4   : > { %v645_v11 = vrot.slane %v644_v10, 2 }
 0x1b6   : > { %v646_v12 = vadd.f32 %v645_v11, %v644_v10 }
 0x1b8   : > { %v647_v13 = vrot.slane %v646_v12, 1 }
 0x1ba   : > { %v648_v14 = vadd.f32 %v647_v13, %v646_v12 }
 0x1bc   : > { %v650_v15 = vsub.f32 0.0, %v648_v14 }
 0x1be   : > { %651 = vst [vmem:[%s306_s17] sm:$0x1] %v650_v15 }
 0x1bf   : > { %992 = shalt.err (!%p989_p9)
}
 0x1c0   : > { %s993_s10 = scalar_lea.hbm %s1323_s26, 16  ;;  %s997_s20 = scalar_lea.hbm %s1409_s7, 32 }
 0x1c1   : > { %p994_p10 = scmp.ne.s32.totalorder %s1323_s26, %s993_s10  ;;  %p998_p13 = scmp.lt.u32.totalorder %s1323_s26, %s1409_s7 }
 0x1c2   : > { %p999_p0 = scmp.lt.u32.totalorder %s997_s20, %s993_s10  ;;  %p1001_p2 = scmp.lt.u32.totalorder %s993_s10, %s1323_s26 }
 0x1c3   : > { %p995_p11 = pnand %p994_p10, %p1167_p5 }
 0x1c4   : > { %p1000_p1 = por %p999_p0, %p998_p13 }
 0x1c5   : > { %p996_p12 = pneg %p995_p11 }
 0x1c6   : > { %p1002_p3 = por %p1001_p2, %p1000_p1 }
 0x1c8   : > { %p1003_p4 = pnand %p1002_p3, %p996_p12 }
 0x1ca   : > { %1006 = shalt.err (!%p1003_p4)
}
 0x1cb   : > { %868 = dma.vmem_to_hbm [thread:$0]  (%p1167_p5), %s1325_s18, 16, %s1323_s26, %s1327_s22   ;;  %vm679_vm4 = vcmp.eq.s32.totalorder %v1234_v33, 0 }
 0x1cc   : > { %s854_s23 = sshll.u32 %s1270_s24, 1  ;;  %s860_s17 = sshll.u32 %s1148_s9, 5 }
 0x1cd   : > { %s313_s12 = scalar_lea.vmem [#allocation6], %s854_s23  ;;  %s1357_s1 = scalar_lea.hbm %s1410_s8, %s860_s17 }
 0x1ce   : > { %s733_s19 = sshll.u32 %s313_s12, 4  ;;  %s1081_s24 = smov [#allocation6]   ;;  %s1359_s19 = int_to_ptr.vmem [resolvable:$true] %s733_s19 }
 0x1cf   : > { %s1007_s9 = scalar_lea.vmem %s1359_s19, 32  ;;  %s1011_s18 = sshll.u32 %s1081_s24, 4  ;;  %s1012_s18 = int_to_ptr.vmem [resolvable:$false] %s1011_s18 }
 0x1d0   : > { %p1008_p7 = scmp.ne.s32.totalorder %s1359_s19, %s1007_s9  ;;  %s1013_s26 = scalar_lea.vmem %s1012_s18, 64 }
 0x1d1   : > { %p1014_p10 = scmp.lt.s32.totalorder %s1359_s19, %s1012_s18  ;;  %p1015_p11 = scmp.lt.s32.totalorder %s1013_s26, %s1007_s9 }
 0x1d2   : > { %p1009_p8 = pnand %p1008_p7, %p1167_p5 }
 0x1d3   : > { %p1016_p12 = por %p1015_p11, %p1014_p10 }
 0x1d4   : > { %p1010_p9 = pneg %p1009_p8 }
 0x1d6   : > { %p1017_p13 = pnand %p1016_p12, %p1010_p9 }
 0x1dd   : > { %s864_s13 = spop %863 }
 0x1de   : > { %s665_s20 = smul.f32 0.001953125, %s864_s13  ;;  %s866_s21 = spop %865 }
 0x1df   : > { %s676_s10 = smul.f32 0.00390625, %s866_s21 }
 0x1e0   : > { %v680_v28 = vstv %s665_s20 }
 0x1e1   : > { %v681_v16 = vstv %s676_s10 }
 0x1e2   : > { %v682_v17 = vsel %vm679_vm4, %v680_v28, %v681_v16 }
 0x1e3   : > { %683 = vst [vmem:[%s313_s12] sm:$0x3] %v682_v17 }
 0x1e4   : > { %1020 = shalt.err (!%p1017_p13)
}
 0x1e5   : > { %s1021_s0 = scalar_lea.hbm %s1357_s1, 32  ;;  %s1025_s13 = scalar_lea.hbm %s1410_s8, 64 }
 0x1e6   : > { %p1022_p0 = scmp.ne.s32.totalorder %s1357_s1, %s1021_s0  ;;  %p1026_p3 = scmp.lt.u32.totalorder %s1357_s1, %s1410_s8 }
 0x1e7   : > { %p1027_p4 = scmp.lt.u32.totalorder %s1025_s13, %s1021_s0  ;;  %p1029_p8 = scmp.lt.u32.totalorder %s1021_s0, %s1357_s1 }
 0x1e8   : > { %p1023_p1 = pnand %p1022_p0, %p1167_p5 }
 0x1e9   : > { %p1028_p7 = por %p1027_p4, %p1026_p3 }
 0x1ea   : > { %p1024_p2 = pneg %p1023_p1 }
 0x1eb   : > { %p1030_p9 = por %p1029_p8, %p1028_p7 }
 0x1ed   : > { %p1031_p10 = pnand %p1030_p9, %p1024_p2 }
 0x1ef   : > { %1034 = shalt.err (!%p1031_p10)
}
 0x1f0   : > { %869 = dma.vmem_to_hbm [thread:$0]  (%p1167_p5), %s1359_s19, 32, %s1357_s1, %s1327_s22  }
 0x1f1 PF: > { %p883_p11 = scmp.ge.s32.totalorder %s1073_s30, 2  ;;  %s745_s21 = sand.u32 1, %s1061_s27  }
 0x1f2   : > { %s746_s10 = scalar_lea.sflag [#allocation3], %s745_s21 }
 0x1f3   : > { %p874_p12 = pnand %p883_p11, %p1171_p6 }
 0x1f5   : > { %1052 = dma.done.wait (!%p874_p12), %s746_s10, 64  }
 0x1f6   : > { %1054 = vsyncadd (!%p874_p12), %s746_s10, 4294967232  ;;  %s1418_s25 = sadd.s32 4294967294, %s1073_s30  }
 0x1f7   : > { %s754_s9 = sand.u32 1, %s1418_s25  }
 0x1f8   : > { %s755_s24 = scalar_lea.sflag [#allocation5], %s754_s9 }
 0x1f9   : > { %1056 = dma.done.wait (!%p874_p12), %s755_s24, 48  }
 0x1fa   : > { %1058 = vsyncadd (!%p874_p12), %s755_s24, 4294967248  ;;  %p22_p5 = scmp.ge.s32.totalorder %s1152_s11, 4   ;;  %s1419_s27 = smov %s1065_s28 }
 0x1fb   : > { %s1420_s28 = smov %s1069_s29  ;;  %s1421_s29 = smov %s1165_s14 }
 0x1fc   : > { %s1422_s30 = smov %s1152_s11  ;;  %24 = sbr.rel (!%p22_p5) target bundleno = 8 (0x8), region = 111 }
 0x203   :  { %768 = vsyncpa [#allocation3], 1 }
 0x204   :  { %770 = vsyncpa [#allocation3 + $0x1], 1 }
 0x205   :  { %771 = vsyncpa [#allocation5], 1 }
 0x206   :  { %773 = vsyncpa [#allocation5 + $0x1], 1 }

</bundles_post_ra>
